<compile_context>
chip_gen: v7x
topology: tpu7x:2x2x1
jax: 0.10.0
libtpu: 0.0.40
codegen_flags: <defaults>
</compile_context>

<pallas_src>
import jax
import jax.numpy as jnp
from jax import lax
from jax.experimental import pallas as pl
from jax.experimental.pallas import tpu as pltpu


def linear_kernel(x_ref, w_ref, b_ref, o_ref):
    """One batch tile of o = x @ w.T + b.

    x_ref: [TB, D]   (features on the lane axis)
    w_ref: [C, D]    (native nn.Linear layout, unpadded)
    b_ref: [1, C]
    o_ref: [TB, C]
    """
    acc = lax.dot_general(
        x_ref[...],
        w_ref[...],
        dimension_numbers=(((1,), (1,)), ((), ())),  # contract D with D
        preferred_element_type=jnp.float32,
    )
    o_ref[...] = (acc + b_ref[...]).astype(o_ref.dtype)


def linear_classifier_forward(x, w, b, *, batch_tile=256):
    """y = x @ w.T + b via a Pallas kernel (no padding, no extra HLO ops).

    x: [B, D] float32
    w: [C, D] float32  (PyTorch nn.Linear weight layout)
    b: [C]    float32
    returns [B, C] float32
    """
    B, D = x.shape
    C, D_w = w.shape
    assert D == D_w and b.shape == (C,)

    b2 = b.reshape(1, C)  # 2-D for an in-kernel lane broadcast; 8-byte metadata op

    # Batch tiling: one block for small B; for large B shard rows across a
    # parallel grid axis so v7x's two TensorCores can both be used.
    if B <= batch_tile or B % batch_tile != 0:
        tb = B
    else:
        tb = batch_tile
    grid = (B // tb,)

    cost = pl.CostEstimate(
        flops=2 * B * D * C,
        transcendentals=0,
        bytes_accessed=(B * D + C * D + C + B * C) * 4,
    )

    return pl.pallas_call(
        linear_kernel,
        out_shape=jax.ShapeDtypeStruct((B, C), x.dtype),
        grid=grid,
        in_specs=[
            pl.BlockSpec((tb, D), lambda i: (i, 0)),   # x  batch tile
            pl.BlockSpec((C, D), lambda i: (0, 0)),    # w  full, resident
            pl.BlockSpec((1, C), lambda i: (0, 0)),    # b  full, resident
        ],
        out_specs=pl.BlockSpec((tb, C), lambda i: (i, 0)),
        compiler_params=pltpu.CompilerParams(
            dimension_semantics=("parallel",),
        ),
        cost_estimate=cost,
    )(x, w, b2)


if __name__ == "__main__":
    INPUT_DIM = 3072   # 3 * 32 * 32, module default
    NUM_CLASSES = 2
    BATCH = 8

    key = jax.random.PRNGKey(0)
    kx, kw, kb = jax.random.split(key, 3)

    # Deterministic inputs / params (nn.Linear-style uniform(-1/sqrt(D), 1/sqrt(D))).
    x = jax.random.normal(kx, (BATCH, INPUT_DIM), dtype=jnp.float32)
    bound = 1.0 / jnp.sqrt(jnp.float32(INPUT_DIM))
    w = jax.random.uniform(
        kw, (NUM_CLASSES, INPUT_DIM), dtype=jnp.float32, minval=-bound, maxval=bound
    )
    b = jax.random.uniform(
        kb, (NUM_CLASSES,), dtype=jnp.float32, minval=-bound, maxval=bound
    )

    y = linear_classifier_forward(x, w, b)
    y = jax.block_until_ready(y)

    # Reference check against plain JAX (same math as torch.nn.Linear).
    y_ref = x @ w.T + b
    assert y.shape == (BATCH, NUM_CLASSES)
    assert jnp.allclose(y, y_ref, atol=1e-4, rtol=1e-4)

    print("KERNEL_OK")
</pallas_src>

<mosaic_0001>
module attributes {stable_mosaic.version = 11 : i64} {
  func.func @linear_kernel(%arg0: i32, %arg1: memref<8x3072xf32, #tpu.memory_space<vmem>>, %arg2: memref<2x3072xf32, #tpu.memory_space<vmem>>, %arg3: memref<1x2xf32, #tpu.memory_space<vmem>>, %arg4: memref<8x2xf32, #tpu.memory_space<vmem>>) attributes {dimension_semantics = [#tpu.dimension_semantics<parallel>], iteration_bounds = array<i64: 1>, scalar_prefetch = 0 : i64, scratch_operands = 0 : i64, tpu.core_type = #tpu.core_type<tc>, window_params = [{transform_indices = @transform_0, window_bounds = array<i64: 8, 3072>}, {pipeline_mode = #tpu.pipeline_mode<synchronous>, transform_indices = @transform_1, window_bounds = array<i64: 2, 3072>}, {pipeline_mode = #tpu.pipeline_mode<synchronous>, transform_indices = @transform_2, window_bounds = array<i64: 1, 2>}, {transform_indices = @transform_3, window_bounds = array<i64: 8, 2>}]} {
    %c0 = arith.constant 0 : index
    %c0_0 = arith.constant 0 : index
    %0 = vector.load %arg1[%c0, %c0_0] : memref<8x3072xf32, #tpu.memory_space<vmem>>, vector<8x3072xf32>
    %c0_1 = arith.constant 0 : index
    %c0_2 = arith.constant 0 : index
    %1 = vector.load %arg2[%c0_1, %c0_2] : memref<2x3072xf32, #tpu.memory_space<vmem>>, vector<2x3072xf32>
    %cst = arith.constant dense<0.000000e+00> : vector<8x2xf32>
    %2 = tpu.matmul %0, %1, %cst {dimension_numbers = #tpu.dot_dimension_numbers<[1], [1], [0], [0], [0, 0, 1, 0], [], []>} : vector<8x3072xf32>, vector<2x3072xf32>, vector<8x2xf32> -> vector<8x2xf32>
    %c0_3 = arith.constant 0 : index
    %c0_4 = arith.constant 0 : index
    %3 = vector.load %arg3[%c0_3, %c0_4] : memref<1x2xf32, #tpu.memory_space<vmem>>, vector<1x2xf32>
    %4 = vector.broadcast %3 : vector<1x2xf32> to vector<8x2xf32>
    %5 = arith.addf %2, %4 : vector<8x2xf32>
    %c0_5 = arith.constant 0 : index
    %c0_6 = arith.constant 0 : index
    %6 = vector.load %arg4[%c0_5, %c0_6] : memref<8x2xf32, #tpu.memory_space<vmem>>, vector<8x2xf32>
    tpu.vector_store %arg4[%c0_5, %c0_6], %5 {strides = array<i32>} : memref<8x2xf32, #tpu.memory_space<vmem>>, vector<8x2xf32>,
    return
  }
  func.func @transform_0(%arg0: i32) -> (i32, i32) {
    %c0_i32 = arith.constant 0 : i32
    %c0_i32_0 = arith.constant 0 : i32
    return %arg0, %c0_i32 : i32, i32
  }
  func.func @transform_1(%arg0: i32) -> (i32, i32) {
    %c0_i32 = arith.constant 0 : i32
    %c0_i32_0 = arith.constant 0 : i32
    %c0_i32_1 = arith.constant 0 : i32
    return %c0_i32, %c0_i32_0 : i32, i32
  }
  func.func @transform_2(%arg0: i32) -> (i32, i32) {
    %c0_i32 = arith.constant 0 : i32
    %c0_i32_0 = arith.constant 0 : i32
    %c0_i32_1 = arith.constant 0 : i32
    return %c0_i32, %c0_i32_0 : i32, i32
  }
  func.func @transform_3(%arg0: i32) -> (i32, i32) {
    %c0_i32 = arith.constant 0 : i32
    %c0_i32_0 = arith.constant 0 : i32
    return %arg0, %c0_i32 : i32, i32
  }
}

</mosaic_0001>

<bundles_post_ra>
// kernel: tpu_custom_call.1
= control target key start
LH: loop header
LB: loop body
LE: loop exit
PB: predicated region body
PF: predicated region fallthrough
CT: control target
= control target key end

     0   :  { %8 = vsyncpa [#allocation3], 0  ;;  %s1202_s0 = inlined_call_operand.hbm [shape: f32[8,3072], index: 0, kind: input, shape index: {}]   ;;  %s1203_s1 = inlined_call_operand.hbm [shape: f32[2,3072], index: 1, kind: input, shape index: {}]   ;;  %s1204_s2 = inlined_call_operand.vmem [shape: f32[1,2], index: 2, kind: input, shape index: {}]   ;;  %s1205_s3 = inlined_call_operand.vmem [shape: f32[8,2], index: 3, kind: output, shape index: {}]  }
   0x1   :  { %9 = vsyncpa [#allocation5], 0  ;;  %s1135_s12 = smov [#allocation2]   ;;  %s1136_s14 = smov [#allocation4]  }
   0x2   :  { %s16_s13 = sshll.u32 %s1135_s12, 4  ;;  %s26_s15 = sshll.u32 %s1136_s14, 4  ;;  %s17_s13 = int_to_ptr.vmem [resolvable:$true] %s16_s13  ;;  %s27_s15 = int_to_ptr.vmem [resolvable:$true] %s26_s15 }
   0x3   :  { %s1087_s18 = scalar_lea.hbm %s1202_s0, 3072 }
   0x4   :  { %p1088_p0 = scmp.ne.s32.totalorder %s1202_s0, %s1087_s18  ;;  %p1091_p1 = scmp.lt.u32.totalorder %s1087_s18, %s1202_s0 }
   0x6   :  { %p1093_p2 = pnand %p1091_p1, %p1088_p0 }
   0x8   :  { %1096 = shalt.err (!%p1093_p2)
}
   0x9   :  { %s1097_s23 = scalar_lea.vmem %s17_s13, 3072  ;;  %p1102_p4 = scmp.lt.s32.totalorder %s17_s13, %s17_s13 }
   0xa   :  { %p1098_p3 = scmp.ne.s32.totalorder %s17_s13, %s1097_s23  ;;  %p1103_p5 = scmp.lt.s32.totalorder %s1097_s23, %s1097_s23 }
   0xc   :  { %p1104_p6 = por %p1103_p5, %p1102_p4 }
   0xe   :  { %p1105_p7 = pnand %p1104_p6, %p1098_p3 }
  0x10   :  { %1108 = shalt.err (!%p1105_p7)
}
  0x11   :  { %19 = dma.hbm_to_vmem [thread:$0]  %s1202_s0, 3072, %s17_s13, [#allocation3]  }
  0x12   :  { %s1109_s28 = scalar_lea.hbm %s1203_s1, 768 }
  0x13   :  { %p1110_p8 = scmp.ne.s32.totalorder %s1203_s1, %s1109_s28  ;;  %p1113_p9 = scmp.lt.u32.totalorder %s1109_s28, %s1203_s1 }
  0x15   :  { %p1115_p10 = pnand %p1113_p9, %p1110_p8 }
  0x17   :  { %1118 = shalt.err (!%p1115_p10)
}
  0x18   :  { %s1119_s6 = scalar_lea.vmem %s27_s15, 768  ;;  %p1124_p12 = scmp.lt.s32.totalorder %s27_s15, %s27_s15 }
  0x19   :  { %p1120_p11 = scmp.ne.s32.totalorder %s27_s15, %s1119_s6  ;;  %p1125_p13 = scmp.lt.s32.totalorder %s1119_s6, %s1119_s6 }
  0x1b   :  { %p1126_p0 = por %p1125_p13, %p1124_p12 }
  0x1d   :  { %p1127_p1 = pnand %p1126_p0, %p1120_p11 }
  0x1f   :  { %1130 = shalt.err (!%p1127_p1)
}
  0x20   :  { %29 = dma.hbm_to_vmem [thread:$0]  %s1203_s1, 768, %s27_s15, [#allocation5]  }
  0x21   :  { %1131 = dma.done.wait [#allocation3], 3072  }
  0x22   :  { %1132 = vsyncadd [#allocation3], 4294964224 }
  0x23   :  { %1133 = dma.done.wait [#allocation5], 768  }
  0x24   :  { %1134 = vsyncadd [#allocation5], 4294966528  ;;  %v85_v0 = vlaneseq  ;;  %v1137_v1 = vmov 1983009808   ;;  %v62_v6 = vld [vmem:[#allocation4] sm:$0xff]  ;;  %v65_v7 = vld [vmem:[#allocation4 + $0x18] sm:$0xff] }
  0x25   :  { %v83_v2 = vunpack.c.l.s4 %v1137_v1  ;;  %v39_v8 = vld [vmem:[#allocation2 + $0x8] sm:$0xff]  ;;  %v81_v9 = vcombine.high %v62_v6, %v62_v6  ;;  %v132_v11 = vcombine.high %v65_v7, %v65_v7  ;;  %v66_v19 = vld [vmem:[#allocation4 + $0x20] sm:$0xff]  ;;  %v41_v26 = vld [vmem:[#allocation2 + $0x18] sm:$0xff]  ;;  %vm1047_vm0 = vcmask 15360  }
  0x26   :  { %v86_v3 = vshrl.u32 %v85_v0, 7  ;;  %271 = vmatprep.mubr.f32.mxu1 %v39_v8  ;;  %v51_v13 = vld [vmem:[#allocation2 + $0x68] sm:$0xff]  ;;  %v38_v24 = vld [vmem:[#allocation2] sm:$0xff]  ;;  %v53_v27 = vld [vmem:[#allocation2 + $0x78] sm:$0xff]  ;;  %v149_v31 = vcombine.high %v66_v19, %v66_v19 }
  0x27   :  { %v84_v4 = vunpack.c.0.s8 %v83_v2  ;;  %691 = vmatprep.mubr.f32.mxu0 %v51_v13  ;;  %v63_v18 = vld [vmem:[#allocation4 + $0x8] sm:$0xff]  ;;  %v50_v25 = vld [vmem:[#allocation2 + $0x60] sm:$0xff]  ;;  %v40_v34 = vld [vmem:[#allocation2 + $0x10] sm:$0xff] }
  0x28   :  { %v98_v30 = vcombine.high %v63_v18, %v63_v18  ;;  %v52_v35 = vld [vmem:[#allocation2 + $0x70] sm:$0xff]  ;;  %v43_v36 = vld [vmem:[#allocation2 + $0x28] sm:$0xff]  ;;  %v42_v44 = vld [vmem:[#allocation2 + $0x20] sm:$0xff] }
  0x29   :  { %v1182_v5 = vsub.s32 %v84_v4, %v86_v3  ;;  %v55_v37 = vld [vmem:[#allocation2 + $0x88] sm:$0xff]  ;;  %v64_v40 = vld [vmem:[#allocation4 + $0x10] sm:$0xff]  ;;  %v54_v45 = vld [vmem:[#allocation2 + $0x80] sm:$0xff] }
  0x2a   :  { %v67_v41 = vld [vmem:[#allocation4 + $0x28] sm:$0xff]  ;;  %v45_v46 = vld [vmem:[#allocation2 + $0x38] sm:$0xff]  ;;  %v115_v50 = vcombine.high %v64_v40, %v64_v40  ;;  %v44_v54 = vld [vmem:[#allocation2 + $0x30] sm:$0xff] }
  0x2b   :  { %v88_v10 = vrot.slane %v62_v6, %v1182_v5  ;;  %v139_v12 = vrot.slane %v65_v7, %v1182_v5  ;;  %v95_v16 = vrot.slane %v81_v9, %v1182_v5  ;;  %v146_v17 = vrot.slane %v132_v11, %v1182_v5  ;;  %v57_v47 = vld [vmem:[#allocation2 + $0x98] sm:$0xff]  ;;  %v56_v55 = vld [vmem:[#allocation2 + $0x90] sm:$0xff]  ;;  %v47_v56 = vld [vmem:[#allocation2 + $0x48] sm:$0xff] }
  0x2c   :  { %v105_v20 = vrot.slane %v63_v18, %v1182_v5  ;;  %v156_v21 = vrot.slane %v66_v19, %v1182_v5  ;;  %v112_v32 = vrot.slane %v98_v30, %v1182_v5  ;;  %v163_v33 = vrot.slane %v149_v31, %v1182_v5  ;;  %v59_v57 = vld [vmem:[#allocation2 + $0xa8] sm:$0xff]  ;;  %v46_v60 = vld [vmem:[#allocation2 + $0x40] sm:$0xff]  ;;  %v49_v62 = vld [vmem:[#allocation2 + $0x58] sm:$0xff] }
  0x2d   :  { %v96_v14 = vcombine.high %v88_v10, %v88_v10  ;;  %v147_v15 = vcombine.high %v139_v12, %v139_v12  ;;  %v97_v22 = vcombine.high %v95_v16, %v95_v16  ;;  %v148_v23 = vcombine.high %v146_v17, %v146_v17  ;;  %v58_v61 = vld [vmem:[#allocation2 + $0xa0] sm:$0xff]  ;;  %v61_v63 = vld [vmem:[#allocation2 + $0xb8] sm:$0xff]  ;;  %v48_v0 = vld [vmem:[#allocation2 + $0x50] sm:$0xff] }
  0x2e   :  { %v113_v28 = vcombine.high %v105_v20, %v105_v20  ;;  %v164_v29 = vcombine.high %v156_v21, %v156_v21  ;;  %v114_v38 = vcombine.high %v112_v32, %v112_v32  ;;  %v165_v39 = vcombine.high %v163_v33, %v163_v33  ;;  %v60_v1 = vld [vmem:[#allocation2 + $0xb0] sm:$0xff]  ;;  %v1055_v2 = vld [vmem:[%s1204_s2] ss:$0 sm:$0xff] }
  0x2f   :  { %207 = vmatprep.subr.mxu1 %v96_v14  ;;  %627 = vmatprep.subr.mxu0 %v147_v15  ;;  %v122_v42 = vrot.slane %v64_v40, %v1182_v5  ;;  %v173_v43 = vrot.slane %v67_v41, %v1182_v5  ;;  %v166_v51 = vcombine.high %v67_v41, %v67_v41 }
  0x30   :  { %208 = vmatpush1.xpose.msra.mxu1 %v88_v10  ;;  %628 = vmatpush1.xpose.msra.mxu0 %v139_v12  ;;  %v129_v52 = vrot.slane %v115_v50, %v1182_v5 }
  0x31   :  { %277 = vmatprep.subr.mxu1 %v97_v22  ;;  %697 = vmatprep.subr.mxu0 %v148_v23  ;;  %v130_v48 = vcombine.high %v122_v42, %v122_v42  ;;  %v181_v49 = vcombine.high %v173_v43, %v173_v43  ;;  %v180_v53 = vrot.slane %v166_v51, %v1182_v5 }
  0x32   :  { %v131_v58 = vcombine.high %v129_v52, %v129_v52 }
  0x33   :  { %272 = vmatmul.mubr.f32.vlgmr.msra.gmra.mrb[0].mxu1 %v38_v24  ;;  %692 = vmatmul.mubr.f32.vlgmr.msra.gmra.mrb[0].mxu0 %v50_v25  ;;  %v182_v59 = vcombine.high %v180_v53, %v180_v53 }
  0x34   :  { %278 = vmatpush1.xpose.msra.mxu1 %v95_v16  ;;  %698 = vmatpush1.xpose.msra.mxu0 %v146_v17 }
  0x35   :  { %341 = vmatprep.mubr.f32.mxu1 %v41_v26  ;;  %761 = vmatprep.mubr.f32.mxu0 %v53_v27 }
  0x36   :  { %347 = vmatprep.subr.mxu1 %v113_v28  ;;  %767 = vmatprep.subr.mxu0 %v164_v29 }
  0x3b   :  { %342 = vmatmul.mubr.f32.vlgmr.msra.gmra.mrb[0].mxu1 %v40_v34  ;;  %762 = vmatmul.mubr.f32.vlgmr.msra.gmra.mrb[0].mxu0 %v52_v35 }
  0x3c   :  { %348 = vmatpush1.xpose.msra.mxu1 %v105_v20  ;;  %768 = vmatpush1.xpose.msra.mxu0 %v156_v21 }
  0x3d   :  { %411 = vmatprep.mubr.f32.mxu1 %v43_v36  ;;  %831 = vmatprep.mubr.f32.mxu0 %v55_v37 }
  0x3e   :  { %417 = vmatprep.subr.mxu1 %v114_v38  ;;  %837 = vmatprep.subr.mxu0 %v165_v39 }
  0x43   :  { %412 = vmatmul.mubr.f32.vlgmr.msra.gmra.mrb[0].mxu1 %v42_v44  ;;  %832 = vmatmul.mubr.f32.vlgmr.msra.gmra.mrb[0].mxu0 %v54_v45 }
  0x44   :  { %418 = vmatpush1.xpose.msra.mxu1 %v112_v32  ;;  %838 = vmatpush1.xpose.msra.mxu0 %v163_v33 }
  0x45   :  { %481 = vmatprep.mubr.f32.mxu1 %v45_v46  ;;  %901 = vmatprep.mubr.f32.mxu0 %v57_v47 }
  0x46   :  { %487 = vmatprep.subr.mxu1 %v130_v48  ;;  %907 = vmatprep.subr.mxu0 %v181_v49 }
  0x4b   :  { %482 = vmatmul.mubr.f32.vlgmr.msra.gmra.mrb[0].mxu1 %v44_v54  ;;  %902 = vmatmul.mubr.f32.vlgmr.msra.gmra.mrb[0].mxu0 %v56_v55 }
  0x4c   :  { %488 = vmatpush1.xpose.msra.mxu1 %v122_v42  ;;  %908 = vmatpush1.xpose.msra.mxu0 %v173_v43 }
  0x4d   :  { %551 = vmatprep.mubr.f32.mxu1 %v47_v56  ;;  %971 = vmatprep.mubr.f32.mxu0 %v59_v57 }
  0x4e   :  { %557 = vmatprep.subr.mxu1 %v131_v58  ;;  %977 = vmatprep.subr.mxu0 %v182_v59 }
  0x53   :  { %552 = vmatmul.mubr.f32.vlgmr.msra.gmra.mrb[0].mxu1 %v46_v60  ;;  %972 = vmatmul.mubr.f32.vlgmr.msra.gmra.mrb[0].mxu0 %v58_v61 }
  0x54   :  { %558 = vmatpush1.xpose.msra.mxu1 %v129_v52  ;;  %978 = vmatpush1.xpose.msra.mxu0 %v180_v53 }
  0x55   :  { %621 = vmatprep.mubr.f32.mxu1 %v49_v62  ;;  %1041 = vmatprep.mubr.f32.mxu0 %v61_v63 }
  0x5b   :  { %622 = vmatmul.mubr.f32.vlgmr.msra.gmra.mrb[0].mxu1 %v48_v0  ;;  %1042 = vmatmul.mubr.f32.vlgmr.msra.gmra.mrb[0].mxu0 %v60_v1 }
 0x12e   :  { %v623_v3 = vpop.f32.mrb[0].mxu1  ;;  %v1043_v4 = vpop.f32.mrb[0].mxu0 }
 0x12f   :  { %v1056_v5 = vadd.f32 %v1055_v2, %v623_v3  ;;  %v625_v6 = vpop.f32.mrb[1].mxu1  ;;  %v1045_v7 = vpop.f32.mrb[1].mxu0 }
 0x131   :  { %v1057_v8 = vadd.f32 %v1056_v5, %v1043_v4 }
 0x133   :  { %1048 = vst.msk [vmem:[%s1205_s3] sm:$0xff] %vm1047_vm0, %v1057_v8 }
 0x134   :  { %1053 = vsyncpa [#allocation3], 1 }
 0x135   :  { %1054 = vsyncpa [#allocation5], 1 }

</bundles_post_ra>
